<compile_context>
chip_gen: v7x
topology: tpu7x:2x2x1
jax: 0.10.0
libtpu: 0.0.40
codegen_flags: <defaults>
</compile_context>

<pallas_src>
import jax
import jax.numpy as jnp
import numpy as np
from jax import lax
from jax.experimental import pallas as pl
from jax.experimental.pallas import tpu as pltpu


# ------------------------- parameter construction (plain-JAX glue) -------------------------

def get_hankel(seq_len: int) -> jnp.ndarray:
    entries = jnp.arange(1, seq_len + 1, dtype=jnp.float32)
    i_plus_j = entries[:, None] + entries[None, :]
    return 2.0 / (i_plus_j ** 3 - i_plus_j)


def get_spectral_filters(seq_len: int, k: int) -> jnp.ndarray:
    Z = get_hankel(seq_len)
    sigma, phi = jnp.linalg.eigh(Z)            # ascending eigenvalues
    sigma_k = jnp.maximum(sigma[-k:], 1e-9)
    phi_k = phi[:, -k:] * sigma_k ** 0.25
    return phi_k.astype(jnp.float32)           # (seq_len, k)


def linear_init(key, fan_in: int, fan_out: int):
    # PyTorch nn.Linear default: U(-1/sqrt(fan_in), 1/sqrt(fan_in)) for W and b.
    kw, kb = jax.random.split(key)
    bound = 1.0 / np.sqrt(fan_in)
    w = jax.random.uniform(kw, (fan_in, fan_out), jnp.float32, -bound, bound)
    b = jax.random.uniform(kb, (1, fan_out), jnp.float32, -bound, bound)
    return w, b


def make_params(seq_len: int, d_model: int, k: int, key):
    k1, k2, k3 = jax.random.split(key, 3)
    w_pre, b_pre = linear_init(k1, d_model, seq_len)   # pre_proj (d_model != seq_len)
    w_v, b_v = linear_init(k2, d_model, k)             # v_proj
    w_o, b_o = linear_init(k3, k, d_model)             # o_proj
    return dict(
        w_pre=w_pre, b_pre=b_pre,
        q_filt=get_spectral_filters(seq_len, k),
        k_filt=get_spectral_filters(seq_len, k),
        w_v=w_v, b_v=b_v,
        w_o=w_o, b_o=b_o,
        decay=jnp.ones((1, seq_len), jnp.float32),
    )


# ------------------------------------- Pallas kernel -------------------------------------

def _make_kernel(compute_dtype):
    cd = compute_dtype

    def kernel(x_ref, wq_ref, bq_ref, wk_ref, bk_ref, wv_ref, bv_ref,
               wo_ref, bo_ref, decay_ref, o_ref, h_ref):
        c = pl.program_id(1)

        # Reset the carried (k,k) cumsum state at the start of each batch element.
        @pl.when(c == 0)
        def _():
            h_ref[...] = jnp.zeros_like(h_ref)

        x = x_ref[0].astype(cd)                                        # (TC, d)

        # Fused (pre_proj @ filter) projections; f32 accumulation, f32 bias add.
        q = jnp.dot(x, wq_ref[...].astype(cd),
                    preferred_element_type=jnp.float32) + bq_ref[...]   # (TC, k)
        kk = jnp.dot(x, wk_ref[...].astype(cd),
                     preferred_element_type=jnp.float32) + bk_ref[...]  # (TC, k)
        v = jnp.dot(x, wv_ref[...].astype(cd),
                    preferred_element_type=jnp.float32) + bv_ref[...]   # (TC, k)

        # Fold the per-source decay into K: (TC,k) * (TC,1)  (tiny VPU multiply).
        kk = kk * decay_ref[...]

        qc = q.astype(cd)
        vc = v.astype(cd)
        kc = kk.astype(cd)

        # Contribution of all previous chunks via the carried (k,k) state.
        y = jnp.dot(qc, h_ref[...].astype(cd),
                    preferred_element_type=jnp.float32)                 # (TC, k)

        # Within-chunk causal attention: s[t,u] = q[t].v[u], keep u <= t.
        # dot_general contracts axis 1 against axis 1 -> no explicit transpose.
        s = lax.dot_general(qc, vc, dimension_numbers=(((1,), (1,)), ((), ())),
                            preferred_element_type=jnp.float32)         # (TC, TC)
        tc = s.shape[0]
        t_idx = lax.broadcasted_iota(jnp.int32, (tc, tc), 0)
        u_idx = lax.broadcasted_iota(jnp.int32, (tc, tc), 1)
        s = jnp.where(u_idx <= t_idx, s, 0.0)
        y = y + jnp.dot(s.astype(cd), kc, preferred_element_type=jnp.float32)

        # Advance the carried cumsum state:  H += V^T @ (decay * K)   (k, k)
        h_ref[...] += lax.dot_general(vc, kc,
                                      dimension_numbers=(((0,), (0,)), ((), ())),
                                      preferred_element_type=jnp.float32)

        # Output projection: (TC, k) @ (k, d) + (1, d).
        o_ref[0] = (jnp.dot(y.astype(cd), wo_ref[...].astype(cd),
                            preferred_element_type=jnp.float32)
                    + bo_ref[...]).astype(o_ref.dtype)

    return kernel


def spectral_attention(x, params, *, chunk=256, compute_dtype=jnp.bfloat16):
    B, T, d = x.shape
    k = params["q_filt"].shape[1]

    TC = min(chunk, T)
    assert T % TC == 0, "seq_len must be divisible by the chunk size"
    assert TC == T or TC % 8 == 0, "chunk must be a multiple of 8 (sublane tiling)"
    C = T // TC

    # ---- exact algebraic fusion of pre_proj into the spectral filters (wrapper-side) ----
    w_q = params["w_pre"] @ params["q_filt"]          # (d, k)
    b_q = params["b_pre"] @ params["q_filt"]          # (1, k)
    w_k = params["w_pre"] @ params["k_filt"]          # (d, k)
    b_k = params["b_pre"] @ params["k_filt"]          # (1, k)
    decay_col = params["decay"].reshape(T, 1)         # chunked along the sublane dim

    def full(shape):
        return pl.BlockSpec(shape, lambda b, c, _n=len(shape): (0,) * _n)

    flops_per_step = (2 * TC * d * k * 3        # q / k / v projections
                      + 2 * TC * k * k * 2      # q @ H and the H update
                      + 2 * TC * TC * k * 2     # scores and scores @ K
                      + 2 * TC * k * d)         # o_proj
    bytes_accessed = 4 * (2 * B * T * d                          # x in, y out
                          + 4 * d * k + 4 * k + d + T)           # weights / biases / decay

    return pl.pallas_call(
        _make_kernel(compute_dtype),
        out_shape=jax.ShapeDtypeStruct((B, T, d), jnp.float32),
        grid=(B, C),
        in_specs=[
            pl.BlockSpec((1, TC, d), lambda b, c: (b, c, 0)),    # x chunk
            full((d, k)), full((1, k)),                          # fused w_q, b_q
            full((d, k)), full((1, k)),                          # fused w_k, b_k
            full((d, k)), full((1, k)),                          # w_v, b_v
            full((k, d)), full((1, d)),                          # w_o, b_o
            pl.BlockSpec((TC, 1), lambda b, c: (c, 0)),          # decay chunk (as a column)
        ],
        out_specs=pl.BlockSpec((1, TC, d), lambda b, c: (b, c, 0)),
        scratch_shapes=[pltpu.VMEM((k, k), jnp.float32)],        # carried cumsum state H
        compiler_params=pltpu.CompilerParams(
            dimension_semantics=("parallel", "arbitrary"),       # batch parallel, chunk carries H
            vmem_limit_bytes=32 * 1024 * 1024,                   # explicit; safe on v5e/v6e/v7x
        ),
        cost_estimate=pl.CostEstimate(
            flops=int(B * C * flops_per_step),
            transcendentals=0,
            bytes_accessed=int(bytes_accessed),
        ),
    )(x, w_q, b_q, w_k, b_k, params["w_v"], params["b_v"],
      params["w_o"], params["b_o"], decay_col)


# ------------------------------ plain-JAX reference (exact cumsum form) ------------------------------

def spectral_attention_ref(x, params):
    B, T, d = x.shape
    x_proj = x @ params["w_pre"] + params["b_pre"]
    Q = jnp.einsum('bti,ik->btk', x_proj, params["q_filt"])
    K = jnp.einsum('bti,ik->btk', x_proj, params["k_filt"])
    V = x @ params["w_v"] + params["b_v"]
    Z = jnp.einsum('btp,btn->btpn', V, K)
    decay = params["decay"].reshape(1, T, 1, 1)
    H = jnp.cumsum(Z * decay, axis=1)
    Y = jnp.einsum('btk,btkn->btn', Q, H)
    return Y @ params["w_o"] + params["b_o"]


# ----------------------------------------------- main -----------------------------------------------

if __name__ == "__main__":
    B, T, D, K = 2, 16, 32, 8          # batch, seq_len, d_model, k  (d_model != seq_len -> pre_proj active)
    key = jax.random.PRNGKey(0)
    kx, kp = jax.random.split(key)
    x = jax.random.normal(kx, (B, T, D), jnp.float32)
    params = make_params(T, D, K, kp)

    ref = jax.block_until_ready(spectral_attention_ref(x, params))

    # Exact-precision path (f32 MXU operands); chunk=8 -> 2 chunks, exercises the carried state.
    out_f32 = jax.block_until_ready(
        spectral_attention(x, params, chunk=8, compute_dtype=jnp.float32))
    assert out_f32.shape == (B, T, D)
    np.testing.assert_allclose(np.asarray(out_f32), np.asarray(ref), rtol=1e-4, atol=1e-4)

    # Performance path (bf16 MXU operands, f32 accumulation): check to bf16 accuracy.
    out_bf16 = jax.block_until_ready(
        spectral_attention(x, params, chunk=8, compute_dtype=jnp.bfloat16))
    err = np.linalg.norm(np.asarray(out_bf16) - np.asarray(ref))
    scale = np.linalg.norm(np.asarray(ref)) + 1e-6
    assert err / scale < 3e-2, f"bf16 path relative error too large: {err / scale:.4f}"

    print("KERNEL_OK")
</pallas_src>

<mosaic_0001>
module attributes {stable_mosaic.version = 11 : i64} {
  func.func @kernel(%arg0: i32, %arg1: i32, %arg2: memref<1x8x32xf32, #tpu.memory_space<vmem>>, %arg3: memref<32x8xf32, #tpu.memory_space<vmem>>, %arg4: memref<1x8xf32, #tpu.memory_space<vmem>>, %arg5: memref<32x8xf32, #tpu.memory_space<vmem>>, %arg6: memref<1x8xf32, #tpu.memory_space<vmem>>, %arg7: memref<32x8xf32, #tpu.memory_space<vmem>>, %arg8: memref<1x8xf32, #tpu.memory_space<vmem>>, %arg9: memref<8x32xf32, #tpu.memory_space<vmem>>, %arg10: memref<1x32xf32, #tpu.memory_space<vmem>>, %arg11: memref<8x1xf32, #tpu.memory_space<vmem>>, %arg12: memref<1x8x32xf32, #tpu.memory_space<vmem>>, %arg13: memref<8x8xf32, #tpu.memory_space<vmem>>) attributes {dimension_semantics = [#tpu.dimension_semantics<parallel>, #tpu.dimension_semantics<arbitrary>], iteration_bounds = array<i64: 2, 2>, scalar_prefetch = 0 : i64, scratch_operands = 1 : i64, tpu.core_type = #tpu.core_type<tc>, window_params = [{transform_indices = @transform_0, window_bounds = array<i64: 1, 8, 32>}, {pipeline_mode = #tpu.pipeline_mode<synchronous>, transform_indices = @transform_1, window_bounds = array<i64: 32, 8>}, {pipeline_mode = #tpu.pipeline_mode<synchronous>, transform_indices = @transform_2, window_bounds = array<i64: 1, 8>}, {pipeline_mode = #tpu.pipeline_mode<synchronous>, transform_indices = @transform_3, window_bounds = array<i64: 32, 8>}, {pipeline_mode = #tpu.pipeline_mode<synchronous>, transform_indices = @transform_4, window_bounds = array<i64: 1, 8>}, {pipeline_mode = #tpu.pipeline_mode<synchronous>, transform_indices = @transform_5, window_bounds = array<i64: 32, 8>}, {pipeline_mode = #tpu.pipeline_mode<synchronous>, transform_indices = @transform_6, window_bounds = array<i64: 1, 8>}, {pipeline_mode = #tpu.pipeline_mode<synchronous>, transform_indices = @transform_7, window_bounds = array<i64: 8, 32>}, {pipeline_mode = #tpu.pipeline_mode<synchronous>, transform_indices = @transform_8, window_bounds = array<i64: 1, 32>}, {transform_indices = @transform_9, window_bounds = array<i64: 8, 1>}, {transform_indices = @transform_10, window_bounds = array<i64: 1, 8, 32>}]} {
    %c0_i32 = arith.constant 0 : i32
    %0 = arith.cmpi eq, %arg1, %c0_i32 : i32
    %1 = arith.extui %0 : i1 to i32
    %c0_i32_0 = arith.constant 0 : i32
    %2 = arith.cmpi ne, %1, %c0_i32_0 : i32
    scf.if %2 {
      %cst_38 = arith.constant 0.000000e+00 : f32
      %45 = vector.broadcast %cst_38 : f32 to vector<8x8xf32>
      %c0_39 = arith.constant 0 : index
      %c0_40 = arith.constant 0 : index
      %46 = vector.load %arg13[%c0_39, %c0_40] : memref<8x8xf32, #tpu.memory_space<vmem>>, vector<8x8xf32>
      tpu.vector_store %arg13[%c0_39, %c0_40], %45 {strides = array<i32>} : memref<8x8xf32, #tpu.memory_space<vmem>>, vector<8x8xf32>,
    } else {
    }
    %c0 = arith.constant 0 : index
    %c0_1 = arith.constant 0 : index
    %c0_2 = arith.constant 0 : index
    %3 = vector.load %arg2[%c0, %c0_1, %c0_2] : memref<1x8x32xf32, #tpu.memory_space<vmem>>, vector<1x8x32xf32>
    %4 = vector.shape_cast %3 : vector<1x8x32xf32> to vector<8x32xf32>
    %c0_3 = arith.constant 0 : index
    %c0_4 = arith.constant 0 : index
    %5 = vector.load %arg3[%c0_3, %c0_4] : memref<32x8xf32, #tpu.memory_space<vmem>>, vector<32x8xf32>
    %cst = arith.constant dense<0.000000e+00> : vector<8x8xf32>
    %6 = tpu.matmul %4, %5, %cst {dimension_numbers = #tpu.dot_dimension_numbers<[1], [0], [0], [1], [0, 0, 1, 1], [], []>} : vector<8x32xf32>, vector<32x8xf32>, vector<8x8xf32> -> vector<8x8xf32>
    %c0_5 = arith.constant 0 : index
    %c0_6 = arith.constant 0 : index
    %7 = vector.load %arg4[%c0_5, %c0_6] : memref<1x8xf32, #tpu.memory_space<vmem>>, vector<1x8xf32>
    %8 = vector.broadcast %7 : vector<1x8xf32> to vector<8x8xf32>
    %9 = arith.addf %6, %8 : vector<8x8xf32>
    %c0_7 = arith.constant 0 : index
    %c0_8 = arith.constant 0 : index
    %10 = vector.load %arg5[%c0_7, %c0_8] : memref<32x8xf32, #tpu.memory_space<vmem>>, vector<32x8xf32>
    %cst_9 = arith.constant dense<0.000000e+00> : vector<8x8xf32>
    %11 = tpu.matmul %4, %10, %cst_9 {dimension_numbers = #tpu.dot_dimension_numbers<[1], [0], [0], [1], [0, 0, 1, 1], [], []>} : vector<8x32xf32>, vector<32x8xf32>, vector<8x8xf32> -> vector<8x8xf32>
    %c0_10 = arith.constant 0 : index
    %c0_11 = arith.constant 0 : index
    %12 = vector.load %arg6[%c0_10, %c0_11] : memref<1x8xf32, #tpu.memory_space<vmem>>, vector<1x8xf32>
    %13 = vector.broadcast %12 : vector<1x8xf32> to vector<8x8xf32>
    %14 = arith.addf %11, %13 : vector<8x8xf32>
    %c0_12 = arith.constant 0 : index
    %c0_13 = arith.constant 0 : index
    %15 = vector.load %arg7[%c0_12, %c0_13] : memref<32x8xf32, #tpu.memory_space<vmem>>, vector<32x8xf32>
    %cst_14 = arith.constant dense<0.000000e+00> : vector<8x8xf32>
    %16 = tpu.matmul %4, %15, %cst_14 {dimension_numbers = #tpu.dot_dimension_numbers<[1], [0], [0], [1], [0, 0, 1, 1], [], []>} : vector<8x32xf32>, vector<32x8xf32>, vector<8x8xf32> -> vector<8x8xf32>
    %c0_15 = arith.constant 0 : index
    %c0_16 = arith.constant 0 : index
    %17 = vector.load %arg8[%c0_15, %c0_16] : memref<1x8xf32, #tpu.memory_space<vmem>>, vector<1x8xf32>
    %18 = vector.broadcast %17 : vector<1x8xf32> to vector<8x8xf32>
    %19 = arith.addf %16, %18 : vector<8x8xf32>
    %c0_17 = arith.constant 0 : index
    %c0_18 = arith.constant 0 : index
    %20 = vector.load %arg11[%c0_17, %c0_18] : memref<8x1xf32, #tpu.memory_space<vmem>>, vector<8x1xf32>
    %21 = vector.broadcast %20 : vector<8x1xf32> to vector<8x8xf32>
    %22 = arith.mulf %14, %21 : vector<8x8xf32>
    %c0_19 = arith.constant 0 : index
    %c0_20 = arith.constant 0 : index
    %23 = vector.load %arg13[%c0_19, %c0_20] : memref<8x8xf32, #tpu.memory_space<vmem>>, vector<8x8xf32>
    %cst_21 = arith.constant dense<0.000000e+00> : vector<8x8xf32>
    %24 = tpu.matmul %9, %23, %cst_21 {dimension_numbers = #tpu.dot_dimension_numbers<[1], [0], [0], [1], [0, 0, 1, 1], [], []>} : vector<8x8xf32>, vector<8x8xf32>, vector<8x8xf32> -> vector<8x8xf32>
    %cst_22 = arith.constant dense<0.000000e+00> : vector<8x8xf32>
    %25 = tpu.matmul %9, %19, %cst_22 {dimension_numbers = #tpu.dot_dimension_numbers<[1], [1], [0], [0], [0, 0, 1, 0], [], []>} : vector<8x8xf32>, vector<8x8xf32>, vector<8x8xf32> -> vector<8x8xf32>
    %26 = tpu.iota {dimensions = array<i32: 0>} : vector<8x8xi32>
    %27 = tpu.iota {dimensions = array<i32: 1>} : vector<8x8xi32>
    %28 = arith.cmpi sle, %27, %26 : vector<8x8xi32>
    %cst_23 = arith.constant 0.000000e+00 : f32
    %29 = vector.broadcast %cst_23 : f32 to vector<8x8xf32>
    %30 = arith.select %28, %25, %29 : vector<8x8xi1>, vector<8x8xf32>
    %cst_24 = arith.constant dense<0.000000e+00> : vector<8x8xf32>
    %31 = tpu.matmul %30, %22, %cst_24 {dimension_numbers = #tpu.dot_dimension_numbers<[1], [0], [0], [1], [0, 0, 1, 1], [], []>} : vector<8x8xf32>, vector<8x8xf32>, vector<8x8xf32> -> vector<8x8xf32>
    %32 = arith.addf %24, %31 : vector<8x8xf32>
    %c0_25 = arith.constant 0 : index
    %c0_26 = arith.constant 0 : index
    %33 = vector.load %arg13[%c0_25, %c0_26] : memref<8x8xf32, #tpu.memory_space<vmem>>, vector<8x8xf32>
    %cst_27 = arith.constant dense<0.000000e+00> : vector<8x8xf32>
    %34 = tpu.matmul %19, %22, %cst_27 {dimension_numbers = #tpu.dot_dimension_numbers<[0], [0], [1], [1], [0, 1, 1, 1], [], []>} : vector<8x8xf32>, vector<8x8xf32>, vector<8x8xf32> -> vector<8x8xf32>
    %35 = arith.addf %33, %34 : vector<8x8xf32>
    %c0_28 = arith.constant 0 : index
    %c0_29 = arith.constant 0 : index
    %36 = vector.load %arg13[%c0_28, %c0_29] : memref<8x8xf32, #tpu.memory_space<vmem>>, vector<8x8xf32>
    tpu.vector_store %arg13[%c0_28, %c0_29], %35 {strides = array<i32>} : memref<8x8xf32, #tpu.memory_space<vmem>>, vector<8x8xf32>,
    %c0_30 = arith.constant 0 : index
    %c0_31 = arith.constant 0 : index
    %37 = vector.load %arg9[%c0_30, %c0_31] : memref<8x32xf32, #tpu.memory_space<vmem>>, vector<8x32xf32>
    %cst_32 = arith.constant dense<0.000000e+00> : vector<8x32xf32>
    %38 = tpu.matmul %32, %37, %cst_32 {dimension_numbers = #tpu.dot_dimension_numbers<[1], [0], [0], [1], [0, 0, 1, 1], [], []>} : vector<8x8xf32>, vector<8x32xf32>, vector<8x32xf32> -> vector<8x32xf32>
    %c0_33 = arith.constant 0 : index
    %c0_34 = arith.constant 0 : index
    %39 = vector.load %arg10[%c0_33, %c0_34] : memref<1x32xf32, #tpu.memory_space<vmem>>, vector<1x32xf32>
    %40 = vector.broadcast %39 : vector<1x32xf32> to vector<8x32xf32>
    %41 = arith.addf %38, %40 : vector<8x32xf32>
    %c0_35 = arith.constant 0 : index
    %c0_36 = arith.constant 0 : index
    %c0_37 = arith.constant 0 : index
    %42 = vector.load %arg12[%c0_35, %c0_36, %c0_37] : memref<1x8x32xf32, #tpu.memory_space<vmem>>, vector<1x8x32xf32>
    %43 = vector.shape_cast %42 : vector<1x8x32xf32> to vector<8x32xf32>
    %44 = vector.shape_cast %41 : vector<8x32xf32> to vector<1x8x32xf32>
    tpu.vector_store %arg12[%c0_35, %c0_36, %c0_37], %44 {strides = array<i32>} : memref<1x8x32xf32, #tpu.memory_space<vmem>>, vector<1x8x32xf32>,
    return
  }
  func.func @transform_0(%arg0: i32, %arg1: i32) -> (i32, i32, i32) {
    %c0_i32 = arith.constant 0 : i32
    %c0_i32_0 = arith.constant 0 : i32
    return %arg0, %arg1, %c0_i32 : i32, i32, i32
  }
  func.func @transform_1(%arg0: i32, %arg1: i32) -> (i32, i32) {
    %c0_i32 = arith.constant 0 : i32
    %c0_i32_0 = arith.constant 0 : i32
    %c0_i32_1 = arith.constant 0 : i32
    return %c0_i32, %c0_i32_0 : i32, i32
  }
  func.func @transform_2(%arg0: i32, %arg1: i32) -> (i32, i32) {
    %c0_i32 = arith.constant 0 : i32
    %c0_i32_0 = arith.constant 0 : i32
    %c0_i32_1 = arith.constant 0 : i32
    return %c0_i32, %c0_i32_0 : i32, i32
  }
  func.func @transform_3(%arg0: i32, %arg1: i32) -> (i32, i32) {
    %c0_i32 = arith.constant 0 : i32
    %c0_i32_0 = arith.constant 0 : i32
    %c0_i32_1 = arith.constant 0 : i32
    return %c0_i32, %c0_i32_0 : i32, i32
  }
  func.func @transform_4(%arg0: i32, %arg1: i32) -> (i32, i32) {
    %c0_i32 = arith.constant 0 : i32
    %c0_i32_0 = arith.constant 0 : i32
    %c0_i32_1 = arith.constant 0 : i32
    return %c0_i32, %c0_i32_0 : i32, i32
  }
  func.func @transform_5(%arg0: i32, %arg1: i32) -> (i32, i32) {
    %c0_i32 = arith.constant 0 : i32
    %c0_i32_0 = arith.constant 0 : i32
    %c0_i32_1 = arith.constant 0 : i32
    return %c0_i32, %c0_i32_0 : i32, i32
  }
  func.func @transform_6(%arg0: i32, %arg1: i32) -> (i32, i32) {
    %c0_i32 = arith.constant 0 : i32
    %c0_i32_0 = arith.constant 0 : i32
    %c0_i32_1 = arith.constant 0 : i32
    return %c0_i32, %c0_i32_0 : i32, i32
  }
  func.func @transform_7(%arg0: i32, %arg1: i32) -> (i32, i32) {
    %c0_i32 = arith.constant 0 : i32
    %c0_i32_0 = arith.constant 0 : i32
    %c0_i32_1 = arith.constant 0 : i32
    return %c0_i32, %c0_i32_0 : i32, i32
  }
  func.func @transform_8(%arg0: i32, %arg1: i32) -> (i32, i32) {
    %c0_i32 = arith.constant 0 : i32
    %c0_i32_0 = arith.constant 0 : i32
    %c0_i32_1 = arith.constant 0 : i32
    return %c0_i32, %c0_i32_0 : i32, i32
  }
  func.func @transform_9(%arg0: i32, %arg1: i32) -> (i32, i32) {
    %c0_i32 = arith.constant 0 : i32
    %c0_i32_0 = arith.constant 0 : i32
    return %arg1, %c0_i32 : i32, i32
  }
  func.func @transform_10(%arg0: i32, %arg1: i32) -> (i32, i32, i32) {
    %c0_i32 = arith.constant 0 : i32
    %c0_i32_0 = arith.constant 0 : i32
    return %arg0, %arg1, %c0_i32 : i32, i32, i32
  }
}

</mosaic_0001>

<bundles_post_ra>
// kernel: tpu_custom_call.1
= control target key start
LH: loop header
LB: loop body
LE: loop exit
PB: predicated region body
PF: predicated region fallthrough
CT: control target
= control target key end

     0   :  { %15 = vsyncpa [#allocation4], 0  ;;  %s1786_s0 = inlined_call_operand.vmem [shape: f32[2,16,32], index: 0, kind: input, shape index: {}]   ;;  %s1787_s1 = inlined_call_operand.vmem [shape: f32[32,8], index: 1, kind: input, shape index: {}]   ;;  %s1788_s2 = inlined_call_operand.vmem [shape: f32[1,8], index: 2, kind: input, shape index: {}]   ;;  %s1789_s3 = inlined_call_operand.vmem [shape: f32[32,8], index: 3, kind: input, shape index: {}]   ;;  %s1790_s4 = inlined_call_operand.vmem [shape: f32[1,8], index: 4, kind: input, shape index: {}]   ;;  %s1791_s5 = inlined_call_operand.vmem [shape: f32[32,8], index: 5, kind: input, shape index: {}]   ;;  %s1792_s6 = inlined_call_operand.vmem [shape: f32[1,8], index: 6, kind: input, shape index: {}]   ;;  %s1793_s7 = inlined_call_operand.vmem [shape: f32[8,32], index: 7, kind: input, shape index: {}]   ;;  %s1794_s8 = inlined_call_operand.vmem [shape: f32[1,32], index: 8, kind: input, shape index: {}]   ;;  %s1795_s9 = inlined_call_operand.vmem [shape: f32[16,1], index: 9, kind: input, shape index: {}]   ;;  %s1796_s10 = inlined_call_operand.hbm [shape: f32[2,16,32], index: 10, kind: output, shape index: {}]  }
   0x1   :  { %17 = vsyncpa [#allocation4 + $0x1], 0  ;;  %s1548_s13 = smov 0   ;;  %s1550_s14 = smov 0  }
   0x2   :  { %s1552_s15 = smov 0   ;;  %s1554_s16 = smov 0  }
   0x3   :  { %s1556_s17 = smov 0   ;;  %s1558_s18 = smov 0  }
   0x4   :  { %s1560_s19 = smov 0   ;;  %s1562_s20 = smov 0  }
   0x5 LB: > { %1804 = sst [smem:[#allocation6_spill]] %s1457_s13  ;;  %s1183_s21 = sadd.s32 4294967295, %s1485_s20   ;;  %s1485_s20 = sphi %s1562_s20, %s23_s20   ;;  %s1481_s19 = sphi %s1560_s19, %s1821_s19   ;;  %s1477_s18 = sphi %s1558_s18, %s1820_s18   ;;  %s1473_s17 = sphi %s1556_s17, %s1824_s17   ;;  %s1469_s16 = sphi %s1554_s16, %s1818_s16   ;;  %s1465_s15 = sphi %s1552_s15, %s1817_s15   ;;  %s1461_s14 = sphi %s1550_s14, %s1823_s14   ;;  %s1457_s13 = sphi %s1548_s13, %s1822_s13  }
   0x6   : > { %1805 = sst [smem:[#allocation7_spill]] %s1465_s15  ;;  %s1184_s22 = sadd.s32 4294967294, %s1485_s20  }
   0x7   : > { %1806 = sst [smem:[#allocation8_spill]] %s1477_s18  ;;  %s32_s23 = sadd.s32 1, %s1477_s18 }
   0x8   : > { %1807 = sst [smem:[#allocation9_spill]] %s1481_s19  ;;  %p33_p0 = scmp.ge.s32.totalorder %s32_s23, 2 }
   0x9   : > { %s35_s24 = sadd.s32 1, %s1481_s19  ;;  %p276_p1 = scmp.ne.s32.totalorder %s1465_s15, %s1461_s14 }
   0xa   : > { %p277_p2 = scmp.eq.s32.totalorder %s1183_s21, 3  ;;  %s1826_s23 = smov (%p33_p0, %s32_s23), 0 }
   0xb   : > { %1808 = sst [smem:[#allocation10_spill]] %s1826_s23  ;;  %s1828_s24 = smov (!%p33_p0, %s35_s24), %s1481_s19 }
   0xc   : > { %s262_s25 = ssub.s32 %s1477_s18, %s1826_s23  ;;  %p1599_p3 = por %p277_p2, %p276_p1 }
   0xd   : > { %p37_p4 = scmp.ge.s32.totalorder %s1828_s24, 2  ;;  %p282_p5 = scmp.ne.s32.totalorder %s1461_s14, %s1457_s13 }
   0xe   : > { %p283_p6 = scmp.eq.s32.totalorder %s1184_s22, 3  ;;  %p1187_p7 = scmp.ge.s32.totalorder %s1485_s20, 1 }
   0xf   : > { %s1830_s24 = smov (%p37_p4, %s1828_s24), 0  ;;  %p343_p9 = scmp.lt.s32.totalorder %s1485_s20, 5 }
  0x10   : > { %1810 = sst [smem:[#allocation11_spill]] %s1830_s24  ;;  %p1608_p8 = por %p283_p6, %p282_p5 }
  0x11   : > { %s261_s28 = ssub.s32 %s1481_s19, %s1830_s24  ;;  %s266_s29 = sadd.s32 1, %s1465_s15 }
  0x12   : > { %s1811_s27 = scalar_select %p1608_p8, 1, 0 }
  0x13   : > { %s263_s30 = sor.u32 %s262_s25, %s261_s28  ;;  %p344_p10 = pnand %p1187_p7, %p343_p9 }
  0x14   : > { %1812 = sst [smem:[#allocation12_spill]] %s1811_s27  ;;  %p264_p11 = scmp.eq.s32.totalorder %s263_s30, 0 }
  0x15   : > { %347 = sbr.rel (%p344_p10) target bundleno = 933 (0x3a5), region = 60  ;;  %s385_s12 = sand.u32 (!%p344_p10), 1, %s1461_s14  }
  0x16   : > { %s1617_s11 = scalar_select %p264_p11, %s1465_s15, %s266_s29  }
  0x17   : > { %p388_p12 = scmp.lt.s32.totalorder (!%p344_p10), %s1473_s17, 1  ;;  %s1623_s21 = sshll.u32 (!%p344_p10), %s385_s12, 3 }
  0x18   : > { %1813 = sst [smem:[#allocation13_spill]] %s1617_s11  ;;  %p390_p13 = scmp.lt.s32.totalorder (!%p344_p10), %s1469_s16, 1 }
  0x19   : > { %s387_s13 = scalar_lea.vmem (!%p344_p10), [#allocation3], %s1623_s21  ;;  %p1192_p0 = scmp.ne.s32.totalorder (!%p344_p10), %s1469_s16, 0 }
  0x1c   : > { %s389_s22 = scalar_select %p388_p12, %s1473_s17, 1 }
  0x1d   : > { %s391_s25 = scalar_select %p390_p13, %s1469_s16, 1 }
  0x1e   : > { %s1189_s28 = sshll.u32 %s389_s22, 1  ;;  %403 = sbr.rel (%p1192_p0) target bundleno = 37 (0x25), region = 64  ;;  %vm404_vm0 = vcmask (!%p1192_p0), 64512   ;;  %v1487_v0 = vmov (!%p1192_p0), 0.0  }
  0x1f   : > { %s393_s30 = sadd.s32 %s1189_s28, %s391_s25  ;;  %s1191_s29 = sshll.u32 %s391_s25, 3  ;;  %405 = vst.msk [vmem:[#allocation2] sm:$0xff] (!%p1192_p0), %vm404_vm0, %v1487_v0 }
  0x20   : > { %s1190_s24 = sshll.u32 %s393_s30, 3  ;;  %s399_s18 = scalar_lea.vmem %s1795_s9, %s1191_s29 }
  0x21   : > { %s1634_s27 = scalar_lea.vmem %s1786_s0, %s1190_s24 }
  0x25 PF: > { %v407_v1 = vld [vmem:[%s1787_s1] sm:$0xff]  ;;  %v408_v2 = vld [vmem:[%s1787_s1 + $0x8] sm:$0xff]  ;;  %v409_v3 = vld [vmem:[%s1787_s1 + $0x10] sm:$0xff]  ;;  %v1488_v4 = vmov 0.0|0.0   ;;  %vm1489_vm1 = vmmov 0   ;;  %v1490_v7 = vmov 0.0   ;;  %v739_v40 = vlaneseq }
  0x26   : > { %1294 = vmatprep.subr.bf16.mxu0 %v1488_v4  ;;  %v1295_v5 = vpack.c.bf16 %v408_v2, %v407_v1  ;;  %v410_v6 = vld [vmem:[%s1787_s1 + $0x18] sm:$0xff]  ;;  %1244 = vmatprep.mubr.msk.f32.mxu0 %vm1489_vm1, %v1490_v7  ;;  %v1491_v8 = vmov 0   ;;  %v654_v10 = vld [vmem:[%s399_s18] sm:$0xff]  ;;  %v493_v12 = vld [vmem:[%s1789_s3 + $0x8] sm:$0xff]  ;;  %vm418_vm2 = vcmask 261120   ;;  %vm662_vm3 = vcmask 64512  }
  0x27   : > { %1390 = vset.pattern.permute.xlu0 %v1491_v8  ;;  %1300 = vmatprep.subr.bf16.mxu1 %v1488_v4  ;;  %v1298_v9 = vpack.c.bf16 %v410_v6, %v409_v3  ;;  %v492_v11 = vld [vmem:[%s1789_s3] sm:$0xff]  ;;  %v574_v14 = vld [vmem:[%s1791_s5 + $0x8] sm:$0xff]  ;;  %v575_v18 = vld [vmem:[%s1791_s5 + $0x10] sm:$0xff]  ;;  %v740_v41 = vshrl.u32 %v739_v40, 7  ;;  %v742_v42 = vand.u32 127, %v739_v40  ;;  %s1093_s19 = sshll.u32 %s387_s13, 4  ;;  %s1730_s19 = int_to_ptr.vmem [resolvable:$true] %s1093_s19 }
  0x28   : > { %1296 = vmatpush3.bf16.msra.mxu0 %v1295_v5  ;;  %1255 = vmatprep.mubr.msk.f32.mxu1 %vm1489_vm1, %v1490_v7  ;;  %v573_v13 = vld [vmem:[%s1791_s5] sm:$0xff]  ;;  %v1301_v15 = vpack.c.bf16 %v493_v12, %v492_v11  ;;  %v576_v19 = vld [vmem:[%s1791_s5 + $0x18] sm:$0xff]  ;;  %v494_v21 = vld [vmem:[%s1789_s3 + $0x10] sm:$0xff]  ;;  %s1492_s24 = smov [#allocation3]  }
  0x29   : > { %1297 = vmatprep.subr.bf16.mxu0 %v1488_v4  ;;  %657 = vperm.xlu0 %1390, %v654_v10   ;;  %v406_v16 = vld [vmem:[%s1634_s27] sm:$0xff]  ;;  %v1307_v17 = vpack.c.bf16 %v574_v14, %v573_v13  ;;  %v1310_v20 = vpack.c.bf16 %v576_v19, %v575_v18  ;;  %v495_v22 = vld [vmem:[%s1789_s3 + $0x18] sm:$0xff]  ;;  %vm743_vm4 = vcmp.le.s32.totalorder %v742_v42, %v740_v41  ;;  %s1207_s27 = sshll.u32 %s1473_s17, 1  ;;  %s1391_s17 = scalar_lea.vmem %s1730_s19, 128 }
  0x2a   : > { %1302 = vmatpush3.bf16.msra.mxu1 %v1301_v15  ;;  %v1304_v23 = vpack.c.bf16 %v495_v22, %v494_v21  ;;  %v1197_v26 = vld [vmem:[%s1792_s6] ss:$0 sm:$0xff]  ;;  %s1089_s29 = sadd.s32 %s1469_s16, %s1207_s27  ;;  %s1078_s16 = scalar_lea.sflag [#allocation4], %s385_s12 }
  0x2b   : > { %1303 = vmatprep.subr.bf16.mxu1 %v1488_v4  ;;  %v1193_v28 = vld [vmem:[%s1788_s2] ss:$0 sm:$0xff]  ;;  %s1208_s28 = sshll.u32 %s1089_s29, 7  ;;  %p1392_p1 = scmp.ne.s32.totalorder %s1730_s19, %s1391_s17 }
  0x2c   : > { %1299 = vmatpush3.bf16.msra.mxu0 %v1298_v9  ;;  %v1195_v32 = vld [vmem:[%s1790_s4] ss:$0 sm:$0xff]  ;;  %s1728_s18 = scalar_lea.hbm %s1796_s10, %s1208_s28  ;;  %s1395_s11 = sshll.u32 %s1492_s24, 4  ;;  %s1396_s11 = int_to_ptr.vmem [resolvable:$false] %s1395_s11 }
  0x2d   : > { %1306 = vmatprep.subr.bf16.mxu0 %v1488_v4  ;;  %v995_v38 = vld [vmem:[%s1793_s7] sm:$0xff]  ;;  %p1393_p2 = pnand %p1392_p1, %p1599_p3  ;;  %s1397_s30 = scalar_lea.vmem %s1396_s11, 256 }
  0x2e   : > { %1305 = vmatpush3.bf16.msra.mxu1 %v1304_v23  ;;  %v661_v44 = vld [vmem:[#allocation2] sm:$0xff]  ;;  %p1398_p5 = scmp.lt.s32.totalorder %s1730_s19, %s1396_s11  ;;  %p1399_p6 = scmp.lt.s32.totalorder %s1397_s30, %s1391_s17 }
  0x2f   : > { %1245 = vmatmul.mubr.msk.f32.vlgmr.msra.gmra.mrb[0].mxu0 %vm418_vm2, %v406_v16  ;;  %1269 = vmatprep.subr.mxu1 %v1490_v7  ;;  %v1204_v52 = vld [vmem:[%s1794_s8] ss:$0 sm:$0xff]  ;;  %p1394_p4 = pneg %p1393_p2 }
  0x30   : > { %1308 = vmatpush3.bf16.msra.mxu0 %v1307_v17  ;;  %1266 = vmatprep.mubr.msk.f32.mxu0 %vm1489_vm1, %v1490_v7  ;;  %p1400_p7 = por %p1399_p6, %p1398_p5 }
  0x31   : > { %1309 = vmatprep.subr.bf16.mxu0 %v1488_v4  ;;  %1256 = vmatmul.mubr.msk.f32.vlgmr.msra.gmra.mrb[0].mxu1 %vm418_vm2, %v406_v16 }
  0x32   : > { %1271 = vmatprep.mubr.msk.f32.mxu1 %vm1489_vm1, %v1490_v7  ;;  %p1401_p9 = pnand %p1400_p7, %p1394_p4 }
  0x34   : > { %1311 = vmatpush3.bf16.msra.mxu0 %v1310_v20 }
  0x35   : > { %1284 = vmatprep.subr.mxu0 %v1490_v7 }
  0x37   : > { %1267 = vmatmul.mubr.msk.f32.vlgmr.msra.gmra.mrb[2].mxu0 %vm418_vm2, %v406_v16 }
  0x38   : > { %1286 = vmatprep.mubr.msk.f32.mxu0 %vm1489_vm1, %v1490_v7 }
  0xa8   : > { %v658_v34 = vpop.permute.xlu0 %657 }
 0x102   : > { %v488_v24 = vpop.f32.mrb[0].mxu0 }
 0x103   : > { %v1246_v25 = vpop.f32.mrb[1].mxu0  ;;  %v489_v31 = vadd.f32 %v1193_v28, %v488_v24 }
 0x104   : > { %v569_v33 = vpop.f32.mrb[0].mxu1 }
 0x105   : > { %v570_v35 = vadd.f32 %v1195_v32, %v569_v33  ;;  %v1257_v36 = vpop.f32.mrb[1].mxu1 }
 0x107   : > { %v660_v37 = vmul.f32 %v658_v34, %v570_v35 }
 0x109   : > { %1285 = vmatpush3.msra.mxu0 %v660_v37 }
 0x10a   : > { %v650_v27 = vpop.f32.mrb[2].mxu0  ;;  %1289 = vmatprep.subr.mxu0 %v1490_v7 }
 0x10b   : > { %v651_v29 = vadd.f32 %v1197_v26, %v650_v27  ;;  %v1268_v30 = vpop.f32.mrb[3].mxu0 }
 0x10d   : > { %888 = vxpose.xlu0.b32.start.end [1/1] (short) (narrow) %v651_v29, 8  ;;  %1270 = vmatpush3.xpose.msk.msra.mxu1 %vm662_vm3, %v651_v29 }
 0x10e   : > { %1274 = vmatprep.subr.mxu1 %v1490_v7 }
 0x110   : > { %1272 = vmatmul.mubr.msk.f32.vlgmr.msra.gmra.mrb[2].mxu1 %vm662_vm3, %v489_v31 }
 0x111   : > { %1276 = vmatprep.mubr.msk.f32.mxu1 %vm1489_vm1, %v1490_v7  ;;  %1275 = vmatpush3.msra.mxu1 %v660_v37 }
 0x112   : > { %1279 = vmatprep.subr.mxu1 %v1490_v7 }
 0x18d   : > { %v904_v39 = vpop.trf.xlu0 }
 0x18e   : > { %1287 = vmatmul.mubr.msk.f32.vlgmr.msra.gmra.mrb[4].mxu0 %vm662_vm3, %v904_v39 }
 0x18f   : > { %1290 = vmatpush3.msra.mxu0 %v995_v38  ;;  %1291 = vmatprep.mubr.msk.f32.mxu0 %vm1489_vm1, %v1490_v7 }
 0x1e3   : > { %v735_v43 = vpop.f32.mrb[2].mxu1 }
 0x1e4   : > { %v744_v45 = vsel %vm743_vm4, %v735_v43, 0.0  ;;  %v1273_v46 = vpop.f32.mrb[3].mxu1 }
 0x1e5   : > { %1277 = vmatmul.mubr.msk.f32.vlgmr.msra.gmra.mrb[4].mxu1 %vm662_vm3, %v744_v45 }
 0x1e6   : > { %1280 = vmatpush3.msra.mxu1 %v661_v44  ;;  %1281 = vmatprep.mubr.msk.f32.mxu1 %vm1489_vm1, %v1490_v7 }
 0x1ed   : > { %1282 = vmatmul.mubr.msk.f32.vlgmr.msra.gmra.mrb[4].mxu1 %vm662_vm3, %v489_v31 }
 0x261   : > { %v989_v47 = vpop.f32.mrb[4].mxu0 }
 0x262   : > { %v993_v48 = vadd.f32 %v989_v47, %v661_v44  ;;  %v1288_v49 = vpop.f32.mrb[5].mxu0 }
 0x264   : > { %994 = vst.msk [vmem:[#allocation2] sm:$0xff] %vm662_vm3, %v993_v48 }
 0x2c0   : > { %v884_v50 = vpop.f32.mrb[4].mxu1 }
 0x2c1   : > { %v1283_v51 = vpop.f32.mrb[5].mxu1  ;;  %1292 = vmatmul.mubr.msk.f32.vlgmr.msra.gmra.mrb[6].mxu0 %vm662_vm3, %v884_v50 }
 0x394   : > { %v1072_v53 = vpop.f32.mrb[6].mxu0 }
 0x395   : > { %v1073_v54 = vadd.f32 %v1204_v52, %v1072_v53  ;;  %v1293_v55 = vpop.f32.mrb[7].mxu0 }
 0x397   : > { %1076 = vst.msk [vmem:[%s387_s13] sm:$0xff] %vm418_vm2, %v1073_v54 }
 0x398   : > { %1404 = shalt.err (!%p1401_p9)
}
 0x399   : > { %s1405_s13 = scalar_lea.hbm %s1728_s18, 128  ;;  %s1409_s27 = scalar_lea.hbm %s1796_s10, 512 }
 0x39a   : > { %p1406_p10 = scmp.ne.s32.totalorder %s1728_s18, %s1405_s13  ;;  %p1410_p13 = scmp.lt.u32.totalorder %s1728_s18, %s1796_s10 }
 0x39b   : > { %p1411_p0 = scmp.lt.u32.totalorder %s1409_s27, %s1405_s13  ;;  %p1413_p2 = scmp.lt.u32.totalorder %s1405_s13, %s1728_s18 }
 0x39c   : > { %p1407_p11 = pnand %p1406_p10, %p1599_p3 }
 0x39d   : > { %p1412_p1 = por %p1411_p0, %p1410_p13 }
 0x39e   : > { %p1408_p12 = pneg %p1407_p11 }
 0x39f   : > { %p1414_p4 = por %p1413_p2, %p1412_p1 }
 0x3a1   : > { %p1415_p5 = pnand %p1414_p4, %p1408_p12 }
 0x3a3   : > { %1418 = shalt.err (!%p1415_p5)
}
 0x3a4   : > { %1314 = dma.vmem_to_hbm [thread:$0]  (%p1599_p3), %s1730_s19, 128, %s1728_s18, %s1078_s16  }
 0x3a5 PF: > { %s1814_s25 = sld [smem:[#allocation6_spill]]  ;;  %p1320_p6 = scmp.ge.s32.totalorder %s1485_s20, 2 }
 0x3a7   : > { %p1317_p7 = pnand %p1320_p6, %p1608_p8 }
 0x3ab   : > { %s1105_s23 = sand.u32 1, %s1814_s25  }
 0x3ac   : > { %s1106_s15 = scalar_lea.sflag [#allocation4], %s1105_s23 }
 0x3ad   : > { %1452 = dma.done.wait (!%p1317_p7), %s1106_s15, 128  }
 0x3ae   : > { %1454 = vsyncadd (!%p1317_p7), %s1106_s15, 4294967168  ;;  %s23_s20 = sadd.s32 1, %s1485_s20   ;;  %s1816_s17 = sld [smem:[#allocation7_spill]] }
 0x3af   : > { %p20_p9 = scmp.ge.s32.totalorder %s23_s20, 6   ;;  %s1817_s15 = sld [smem:[#allocation13_spill]] }
 0x3b0   : > { %s1818_s16 = sld [smem:[#allocation8_spill]]  ;;  %s1819_s26 = sld [smem:[#allocation9_spill]] }
 0x3b1   : > { %s1820_s18 = sld [smem:[#allocation10_spill]]  ;;  %s1821_s19 = sld [smem:[#allocation11_spill]] }
 0x3b2   : > { %s1822_s13 = smov %s1461_s14  ;;  %22 = sbr.rel (!%p20_p9) target bundleno = 5 (0x5), region = 102 }
 0x3b4   : > { %s1823_s14 = smov %s1816_s17 }
 0x3b6   : > { %s1824_s17 = smov %s1819_s26 }
 0x3b9   :  { %1111 = vsyncpa [#allocation4], 1 }
 0x3ba   :  { %1113 = vsyncpa [#allocation4 + $0x1], 1 }

</bundles_post_ra>
